<compile_context>
chip_gen: v5e
topology: v5e:2x2
jax: 0.10.0
libtpu: 0.0.40
codegen_flags: <defaults>
</compile_context>

<pallas_src>
import jax
import jax.numpy as jnp
import numpy as np
from jax.experimental import pallas as pl
from jax.experimental.pallas import tpu as pltpu

D_BERT = 768     # BertModel hidden size
D_RESNET = 1000  # torchvision resnet fc output size (folded away before the kernel)
D_FC = 128       # img_fc / text_fc output size
N_CLS = 3        # fusion output size
N_PAD = 128      # lane-padded fusion output width (cols 0:3 valid)


def bert_resnet_kernel(
    pooled_ref,     # (TB, C)        f32   globally avg-pooled image
    emb_ref,        # (TB, TS, 768)  bf16  token embeddings (streamed)
    mask_ref,       # (TB, 1, TS)    bf16  attention mask (0/1, exact)
    w_img_ref,      # (C, 128)       bf16  folded resnet-proj @ img_fc
    b_img_ref,      # (1, 128)       f32
    w_txt_ref,      # (768, 128)     bf16  text_fc
    b_txt_ref,      # (1, 128)       f32
    w_fus_img_ref,  # (128, 128)     bf16  fusion rows 0:128, lane-padded 3->128
    w_fus_txt_ref,  # (128, 128)     bf16  fusion rows 128:256, lane-padded
    b_fus_ref,      # (1, 128)       f32   lane-padded
    out_ref,        # (TB, 128)      f32   lane-padded, cols 0:3 valid
    txt_acc,        # (TB, 768)      f32   scratch: masked token sum
    den_acc,        # (TB, 1)        f32   scratch: mask count
):
    f32 = jnp.float32
    si = pl.program_id(1)

    @pl.when(si == 0)
    def _init():
        txt_acc[...] = jnp.zeros_like(txt_acc)
        den_acc[...] = jnp.zeros_like(den_acc)

    # ---- text branch, streaming part: masked sum over this sequence tile ---
    emb = emb_ref[...]                                   # (TB, TS, 768) bf16
    mask = mask_ref[...]                                 # (TB, 1, TS)   bf16
    # MXU contraction over the sequence axis (per-batch (1,TS)@(TS,768)), f32
    # accumulation; no (TB,TS,768) masked intermediate is materialized.
    part = jnp.einsum("bks,bsd->bkd", mask, emb,
                      preferred_element_type=f32)        # (TB, 1, 768) f32
    txt_acc[...] += part[:, 0, :]
    den_acc[...] += jnp.sum(mask.astype(f32), axis=2)    # (TB, 1) exact count

    # ---- finalize on the last sequence tile --------------------------------
    @pl.when(si == pl.num_programs(1) - 1)
    def _finalize():
        bf16 = jnp.bfloat16

        denom = jnp.maximum(den_acc[...], 1.0)           # guard all-masked rows
        txt768 = txt_acc[...] * (1.0 / denom)            # exact f32 divide, hidden

        txt128 = (jnp.dot(txt768.astype(bf16), w_txt_ref[...],
                          preferred_element_type=f32) + b_txt_ref[...])
        txt128 = jnp.maximum(txt128, 0.0)

        img128 = (jnp.dot(pooled_ref[...].astype(bf16), w_img_ref[...],
                          preferred_element_type=f32) + b_img_ref[...])
        img128 = jnp.maximum(img128, 0.0)

        # fusion: cat([img, txt], 1) @ W + b, written as a split matmul into a
        # lane-dense (TB, 128) output slab.
        out_ref[...] = (
            jnp.dot(img128.astype(bf16), w_fus_img_ref[...],
                    preferred_element_type=f32)
            + jnp.dot(txt128.astype(bf16), w_fus_txt_ref[...],
                      preferred_element_type=f32)
            + b_fus_ref[...])


def _vmem_capacity_bytes():
    """Physical VMEM per TensorCore; conservative v7x default if unqueryable."""
    try:
        cap = getattr(pltpu.get_tpu_info(), "vmem_capacity_bytes", None)
        if cap:
            return int(cap)
    except Exception:
        pass
    return 64 * 1024 * 1024


def _choose_tiles(batch, seq):
    """Generation-aware (TB, TS, vmem_limit_bytes) derived from physical VMEM."""
    cap = _vmem_capacity_bytes()
    # 48 MiB on v7x (64 MiB physical), 96 MiB on v5e/v6e (128 MiB physical).
    vmem_limit = min(int(cap) * 3 // 4, 100 * 1024 * 1024)
    # The double-buffered bf16 embedding stream gets most of the budget; ~8 MiB
    # reserved for weights, mask/pooled/out blocks, scratch and compiler slack.
    emb_budget = min(max(4 << 20, (vmem_limit - (8 << 20)) // 2), 40 << 20)

    # Sequence tile: full (8-aligned) S when small; else 512. Bigger TS means
    # fewer grid steps and more K per MXU push; 512 keeps the mask lane-dense.
    ts = min(512, max(8, -(-seq // 8) * 8))

    row_bytes = ts * D_BERT * 2  # bf16
    cap_tb = max(8, min(512, (emb_budget // row_bytes) // 8 * 8))

    tb = batch if batch <= cap_tb else cap_tb
    # Give the 'parallel' batch axis >=2 programs when it costs <=12.5% pad
    # rows: v7x has 2 TensorCores, and the extra grid step is negligible on
    # 1-TC chips at these tile sizes.
    if batch >= 16 and batch <= cap_tb:
        for tb_try in (max(8, (batch // 2) // 8 * 8), 8):
            if ((-batch) % tb_try) * 8 <= batch:
                tb = tb_try
                break
    # Rebalance so the last batch tile is not mostly padding.
    if batch > tb:
        ntiles = pl.cdiv(batch, tb)
        tb = min(tb, max(8, pl.cdiv(pl.cdiv(batch, ntiles), 8) * 8))
    return tb, ts, vmem_limit


def prepare_kernel_params(params):
    """One-time fold / pad / cast of the module parameters into kernel form.

    Call ONCE and reuse: in particular the vocab*768 f32->bf16 embedding-table
    cast must not be paid per forward call.
    """
    f32, bf16 = jnp.float32, jnp.bfloat16

    # Fold resnet-stand-in projection and img_fc (no nonlinearity in between):
    #   (x @ W_bb + b_bb) @ W_imgfc + b_imgfc == x @ (W_bb W_imgfc) + (b_bb W_imgfc + b_imgfc)
    w_img = params["w_bb"].astype(f32) @ params["w_imgfc"].astype(f32)        # (C, 128)
    b_img = (params["b_bb"].astype(f32) @ params["w_imgfc"].astype(f32)
             + params["b_imgfc"].astype(f32))                                 # (1, 128)

    def pad_lanes(w):  # pad the 3-wide fusion axis to 128 lanes
        out = jnp.zeros((w.shape[0], N_PAD), f32)
        return out.at[:, :w.shape[1]].set(w.astype(f32))

    return dict(
        embed_table=params["embed_table"].astype(bf16),   # cast once, reused
        w_img=w_img.astype(bf16),
        b_img=b_img,
        w_txt=params["w_txtfc"].astype(bf16),
        b_txt=params["b_txtfc"].astype(f32),
        w_fus_img=pad_lanes(params["w_fus_img"]).astype(bf16),
        w_fus_txt=pad_lanes(params["w_fus_txt"]).astype(bf16),
        b_fus=pad_lanes(params["b_fus"]),
    )


def bert_resnet_forward(text_ids, attention_masks, imgs, kp):
    """Forward pass. imgs: (B,C,H,W) NCHW; text_ids/attention_masks: (B,S).
    `kp` is the output of prepare_kernel_params (prepared once)."""
    f32 = jnp.float32
    B, C = imgs.shape[0], imgs.shape[1]
    S = text_ids.shape[1]

    TB, TS, vmem_limit = _choose_tiles(B, S)
    B_pad = pl.cdiv(B, TB) * TB
    S_pad = pl.cdiv(S, TS) * TS

    # Pad the small integer inputs BEFORE the gather so the dominant (B,S,768)
    # bf16 stream is produced directly at its padded shape (no extra HBM copy).
    ids, msk = text_ids, attention_masks
    if B_pad != B or S_pad != S:
        ids = jnp.pad(ids, ((0, B_pad - B), (0, S_pad - S)))
        msk = jnp.pad(msk, ((0, B_pad - B), (0, S_pad - S)))

    # Backbone stand-in glue (outside the kernel):
    pooled = jnp.mean(imgs.astype(f32), axis=(2, 3))                   # (B, C)
    if B_pad != B:
        pooled = jnp.pad(pooled, ((0, B_pad - B), (0, 0)))

    # TODO(synk): the embedding gather still materializes a (B,S,768) bf16
    # array in HBM (one write + one kernel re-read). A true in-kernel gather
    # would need per-token ~1.5 KiB DMAs issued from the TensorCore
    # (scalar-prefetched ids + memory_space=pl.ANY table); at that row size the
    # descriptor-issue cost exceeds the transfer time, so the gather is left to
    # XLA. The per-call f32->bf16 table cast HAS been removed (table is
    # prepared once in prepare_kernel_params).
    emb = kp["embed_table"][ids]                                       # (B_pad, S_pad, 768) bf16
    mask = msk.astype(jnp.bfloat16)[:, None, :]                        # (B_pad, 1, S_pad)

    grid = (B_pad // TB, S_pad // TS)
    const = lambda b, s: (0, 0)  # resident weights

    out = pl.pallas_call(
        bert_resnet_kernel,
        out_shape=jax.ShapeDtypeStruct((B_pad, N_PAD), jnp.float32),
        grid_spec=pltpu.PrefetchScalarGridSpec(
            num_scalar_prefetch=0,
            grid=grid,
            in_specs=[
                pl.BlockSpec((TB, C), lambda b, s: (b, 0)),              # pooled
                pl.BlockSpec((TB, TS, D_BERT), lambda b, s: (b, s, 0)),  # emb
                pl.BlockSpec((TB, 1, TS), lambda b, s: (b, 0, s)),       # mask
                pl.BlockSpec((C, D_FC), const),                          # w_img
                pl.BlockSpec((1, D_FC), const),                          # b_img
                pl.BlockSpec((D_BERT, D_FC), const),                     # w_txt
                pl.BlockSpec((1, D_FC), const),                          # b_txt
                pl.BlockSpec((D_FC, N_PAD), const),                      # w_fus_img
                pl.BlockSpec((D_FC, N_PAD), const),                      # w_fus_txt
                pl.BlockSpec((1, N_PAD), const),                         # b_fus
            ],
            out_specs=pl.BlockSpec((TB, N_PAD), lambda b, s: (b, 0)),
            scratch_shapes=[
                pltpu.VMEM((TB, D_BERT), jnp.float32),   # masked token-sum acc
                pltpu.VMEM((TB, 1), jnp.float32),        # mask-count acc
            ],
        ),
        compiler_params=pltpu.CompilerParams(
            dimension_semantics=("parallel", "arbitrary"),
            vmem_limit_bytes=vmem_limit,
        ),
    )(pooled, emb, mask,
      kp["w_img"], kp["b_img"], kp["w_txt"], kp["b_txt"],
      kp["w_fus_img"], kp["w_fus_txt"], kp["b_fus"])

    return out[:B, :N_CLS]


def init_params(key, *, c, vocab):
    ks = jax.random.split(key, 10)

    def lin(k, fan_in, fan_out):
        return (jax.random.normal(k, (fan_in, fan_out), jnp.float32)
                / jnp.sqrt(jnp.float32(fan_in)))

    return dict(
        embed_table=jax.random.normal(ks[0], (vocab, D_BERT), jnp.float32) * 0.02,
        w_bb=lin(ks[1], c, D_RESNET),
        b_bb=jax.random.normal(ks[2], (1, D_RESNET), jnp.float32) * 0.01,
        w_imgfc=lin(ks[3], D_RESNET, D_FC),
        b_imgfc=jax.random.normal(ks[4], (1, D_FC), jnp.float32) * 0.01,
        w_txtfc=lin(ks[5], D_BERT, D_FC),
        b_txtfc=jax.random.normal(ks[6], (1, D_FC), jnp.float32) * 0.01,
        w_fus_img=lin(ks[7], D_FC, N_CLS),
        w_fus_txt=lin(ks[8], D_FC, N_CLS),
        b_fus=jax.random.normal(ks[9], (1, N_CLS), jnp.float32) * 0.01,
    )


def reference_forward(text_ids, attention_masks, imgs, params):
    """Pure-JAX f32 reference of the same stand-in forward (for validation)."""
    f32 = jnp.float32
    pooled = jnp.mean(imgs.astype(f32), axis=(2, 3))
    img1000 = pooled @ params["w_bb"] + params["b_bb"]
    img128 = jnp.maximum(img1000 @ params["w_imgfc"] + params["b_imgfc"], 0.0)
    emb = params["embed_table"][text_ids]
    mask = attention_masks.astype(f32)[:, :, None]
    denom = jnp.maximum(jnp.sum(mask, axis=1), 1.0)
    txt768 = jnp.sum(emb * mask, axis=1) / denom
    txt128 = jnp.maximum(txt768 @ params["w_txtfc"] + params["b_txtfc"], 0.0)
    return img128 @ params["w_fus_img"] + txt128 @ params["w_fus_txt"] + params["b_fus"]


if __name__ == "__main__":
    B, C, H, W, S, VOCAB = 2, 4, 16, 16, 8, 64

    key = jax.random.PRNGKey(0)
    kpar, kimg, ktxt = jax.random.split(key, 3)

    params = init_params(kpar, c=C, vocab=VOCAB)
    kp = prepare_kernel_params(params)      # one-time fold / pad / bf16 cast

    imgs = jax.random.normal(kimg, (B, C, H, W), jnp.float32)        # NCHW
    text_ids = jax.random.randint(ktxt, (B, S), 0, VOCAB, jnp.int32)
    attention_masks = jnp.ones((B, S), jnp.int32).at[:, -2:].set(0)

    out = bert_resnet_forward(text_ids, attention_masks, imgs, kp)
    out = jax.block_until_ready(out)
    assert out.shape == (B, N_CLS) and out.dtype == jnp.float32

    ref = reference_forward(text_ids, attention_masks, imgs, params)
    np.testing.assert_allclose(np.asarray(out), np.asarray(ref), atol=2e-2, rtol=5e-2)

    print("KERNEL_OK")
</pallas_src>

<mosaic_0001>
module attributes {stable_mosaic.version = 11 : i64} {
  func.func @bert_resnet_kernel(%arg0: i32, %arg1: i32, %arg2: memref<2x4xf32, #tpu.memory_space<vmem>>, %arg3: memref<2x8x768xbf16, #tpu.memory_space<vmem>>, %arg4: memref<2x1x8xbf16, #tpu.memory_space<vmem>>, %arg5: memref<4x128xbf16, #tpu.memory_space<vmem>>, %arg6: memref<1x128xf32, #tpu.memory_space<vmem>>, %arg7: memref<768x128xbf16, #tpu.memory_space<vmem>>, %arg8: memref<1x128xf32, #tpu.memory_space<vmem>>, %arg9: memref<128x128xbf16, #tpu.memory_space<vmem>>, %arg10: memref<128x128xbf16, #tpu.memory_space<vmem>>, %arg11: memref<1x128xf32, #tpu.memory_space<vmem>>, %arg12: memref<2x128xf32, #tpu.memory_space<vmem>>, %arg13: memref<2x768xf32, #tpu.memory_space<vmem>>, %arg14: memref<2x1xf32, #tpu.memory_space<vmem>>) attributes {dimension_semantics = [#tpu.dimension_semantics<parallel>, #tpu.dimension_semantics<arbitrary>], iteration_bounds = array<i64: 1, 1>, scalar_prefetch = 0 : i64, scratch_operands = 2 : i64, tpu.core_type = #tpu.core_type<tc>, window_params = [{transform_indices = @transform_0, window_bounds = array<i64: 2, 4>}, {transform_indices = @transform_1, window_bounds = array<i64: 2, 8, 768>}, {transform_indices = @transform_2, window_bounds = array<i64: 2, 1, 8>}, {pipeline_mode = #tpu.pipeline_mode<synchronous>, transform_indices = @transform_3, window_bounds = array<i64: 4, 128>}, {pipeline_mode = #tpu.pipeline_mode<synchronous>, transform_indices = @transform_4, window_bounds = array<i64: 1, 128>}, {pipeline_mode = #tpu.pipeline_mode<synchronous>, transform_indices = @transform_5, window_bounds = array<i64: 768, 128>}, {pipeline_mode = #tpu.pipeline_mode<synchronous>, transform_indices = @transform_6, window_bounds = array<i64: 1, 128>}, {pipeline_mode = #tpu.pipeline_mode<synchronous>, transform_indices = @transform_7, window_bounds = array<i64: 128, 128>}, {pipeline_mode = #tpu.pipeline_mode<synchronous>, transform_indices = @transform_8, window_bounds = array<i64: 128, 128>}, {pipeline_mode = #tpu.pipeline_mode<synchronous>, transform_indices = @transform_9, window_bounds = array<i64: 1, 128>}, {transform_indices = @transform_10, window_bounds = array<i64: 2, 128>}]} {
    %c0_i32 = arith.constant 0 : i32
    %0 = arith.cmpi eq, %arg1, %c0_i32 : i32
    %1 = arith.extui %0 : i1 to i32
    %c0_i32_0 = arith.constant 0 : i32
    %2 = arith.cmpi ne, %1, %c0_i32_0 : i32
    scf.if %2 {
      %cst_17 = arith.constant 0.000000e+00 : f32
      %18 = vector.broadcast %cst_17 : f32 to vector<2x768xf32>
      %c0_18 = arith.constant 0 : index
      %c0_19 = arith.constant 0 : index
      %19 = vector.load %arg13[%c0_18, %c0_19] : memref<2x768xf32, #tpu.memory_space<vmem>>, vector<2x768xf32>
      tpu.vector_store %arg13[%c0_18, %c0_19], %18 {strides = array<i32>} : memref<2x768xf32, #tpu.memory_space<vmem>>, vector<2x768xf32>,
      %cst_20 = arith.constant 0.000000e+00 : f32
      %20 = vector.broadcast %cst_20 : f32 to vector<2x1xf32>
      %c0_21 = arith.constant 0 : index
      %c0_22 = arith.constant 0 : index
      %21 = vector.load %arg14[%c0_21, %c0_22] : memref<2x1xf32, #tpu.memory_space<vmem>>, vector<2x1xf32>
      tpu.vector_store %arg14[%c0_21, %c0_22], %20 {strides = array<i32>} : memref<2x1xf32, #tpu.memory_space<vmem>>, vector<2x1xf32>,
    } else {
    }
    %c0 = arith.constant 0 : index
    %c0_1 = arith.constant 0 : index
    %c0_2 = arith.constant 0 : index
    %3 = vector.load %arg3[%c0, %c0_1, %c0_2] : memref<2x8x768xbf16, #tpu.memory_space<vmem>>, vector<2x8x768xbf16>
    %c0_3 = arith.constant 0 : index
    %c0_4 = arith.constant 0 : index
    %c0_5 = arith.constant 0 : index
    %4 = vector.load %arg4[%c0_3, %c0_4, %c0_5] : memref<2x1x8xbf16, #tpu.memory_space<vmem>>, vector<2x1x8xbf16>
    "tpu.trace_start"() <{level = 10 : i32, message = "bks,bsd->bkd"}> : () -> ()
    %cst = arith.constant dense<0.000000e+00> : vector<2x1x768xf32>
    %5 = tpu.matmul %4, %3, %cst {dimension_numbers = #tpu.dot_dimension_numbers<[2], [1], [1], [2], [0, 0, 0, 1, 1, 2], [0], [0]>} : vector<2x1x8xbf16>, vector<2x8x768xbf16>, vector<2x1x768xf32> -> vector<2x1x768xf32>
    "tpu.trace_stop"() : () -> ()
    %c0_6 = arith.constant 0 : index
    %c0_7 = arith.constant 0 : index
    %6 = vector.load %arg13[%c0_6, %c0_7] : memref<2x768xf32, #tpu.memory_space<vmem>>, vector<2x768xf32>
    %7 = vector.shape_cast %5 : vector<2x1x768xf32> to vector<2x768xf32>
    %8 = arith.addf %6, %7 : vector<2x768xf32>
    %c0_8 = arith.constant 0 : index
    %c0_9 = arith.constant 0 : index
    %9 = vector.load %arg13[%c0_8, %c0_9] : memref<2x768xf32, #tpu.memory_space<vmem>>, vector<2x768xf32>
    tpu.vector_store %arg13[%c0_8, %c0_9], %8 {strides = array<i32>} : memref<2x768xf32, #tpu.memory_space<vmem>>, vector<2x768xf32>,
    %c0_10 = arith.constant 0 : index
    %c0_11 = arith.constant 0 : index
    %10 = vector.load %arg14[%c0_10, %c0_11] : memref<2x1xf32, #tpu.memory_space<vmem>>, vector<2x1xf32>
    %11 = arith.extf %4 : vector<2x1x8xbf16> to vector<2x1x8xf32>
    %cst_12 = arith.constant dense<0.000000e+00> : vector<2x1xf32>
    %12 = vector.multi_reduction <add>, %11, %cst_12 [2] : vector<2x1x8xf32> to vector<2x1xf32>
    %13 = arith.addf %10, %12 : vector<2x1xf32>
    %c0_13 = arith.constant 0 : index
    %c0_14 = arith.constant 0 : index
    %14 = vector.load %arg14[%c0_13, %c0_14] : memref<2x1xf32, #tpu.memory_space<vmem>>, vector<2x1xf32>
    tpu.vector_store %arg14[%c0_13, %c0_14], %13 {strides = array<i32>} : memref<2x1xf32, #tpu.memory_space<vmem>>, vector<2x1xf32>,
    %c0_i32_15 = arith.constant 0 : i32
    %15 = arith.cmpi eq, %arg1, %c0_i32_15 : i32
    %16 = arith.extui %15 : i1 to i32
    %c0_i32_16 = arith.constant 0 : i32
    %17 = arith.cmpi ne, %16, %c0_i32_16 : i32
    scf.if %17 {
      %c0_17 = arith.constant 0 : index
      %c0_18 = arith.constant 0 : index
      %18 = vector.load %arg14[%c0_17, %c0_18] : memref<2x1xf32, #tpu.memory_space<vmem>>, vector<2x1xf32>
      %cst_19 = arith.constant 1.000000e+00 : f32
      %19 = vector.broadcast %cst_19 : f32 to vector<2x1xf32>
      %20 = arith.maximumf %18, %19 : vector<2x1xf32>
      %c0_20 = arith.constant 0 : index
      %c0_21 = arith.constant 0 : index
      %21 = vector.load %arg13[%c0_20, %c0_21] : memref<2x768xf32, #tpu.memory_space<vmem>>, vector<2x768xf32>
      %cst_22 = arith.constant 1.000000e+00 : f32
      %22 = vector.broadcast %cst_22 : f32 to vector<2x1xf32>
      %23 = arith.divf %22, %20 : vector<2x1xf32>
      %24 = vector.broadcast %23 : vector<2x1xf32> to vector<2x768xf32>
      %25 = arith.mulf %21, %24 : vector<2x768xf32>
      %26 = arith.truncf %25 : vector<2x768xf32> to vector<2x768xbf16>
      %c0_23 = arith.constant 0 : index
      %c0_24 = arith.constant 0 : index
      %27 = vector.load %arg7[%c0_23, %c0_24] : memref<768x128xbf16, #tpu.memory_space<vmem>>, vector<768x128xbf16>
      %cst_25 = arith.constant dense<0.000000e+00> : vector<2x128xf32>
      %28 = tpu.matmul %26, %27, %cst_25 {dimension_numbers = #tpu.dot_dimension_numbers<[1], [0], [0], [1], [0, 0, 1, 1], [], []>} : vector<2x768xbf16>, vector<768x128xbf16>, vector<2x128xf32> -> vector<2x128xf32>
      %c0_26 = arith.constant 0 : index
      %c0_27 = arith.constant 0 : index
      %29 = vector.load %arg8[%c0_26, %c0_27] : memref<1x128xf32, #tpu.memory_space<vmem>>, vector<1x128xf32>
      %30 = vector.broadcast %29 : vector<1x128xf32> to vector<2x128xf32>
      %31 = arith.addf %28, %30 : vector<2x128xf32>
      %cst_28 = arith.constant 0.000000e+00 : f32
      %32 = vector.broadcast %cst_28 : f32 to vector<2x128xf32>
      %33 = arith.maximumf %31, %32 : vector<2x128xf32>
      %c0_29 = arith.constant 0 : index
      %c0_30 = arith.constant 0 : index
      %34 = vector.load %arg2[%c0_29, %c0_30] : memref<2x4xf32, #tpu.memory_space<vmem>>, vector<2x4xf32>
      %35 = arith.truncf %34 : vector<2x4xf32> to vector<2x4xbf16>
      %c0_31 = arith.constant 0 : index
      %c0_32 = arith.constant 0 : index
      %36 = vector.load %arg5[%c0_31, %c0_32] : memref<4x128xbf16, #tpu.memory_space<vmem>>, vector<4x128xbf16>
      %cst_33 = arith.constant dense<0.000000e+00> : vector<2x128xf32>
      %37 = tpu.matmul %35, %36, %cst_33 {dimension_numbers = #tpu.dot_dimension_numbers<[1], [0], [0], [1], [0, 0, 1, 1], [], []>} : vector<2x4xbf16>, vector<4x128xbf16>, vector<2x128xf32> -> vector<2x128xf32>
      %c0_34 = arith.constant 0 : index
      %c0_35 = arith.constant 0 : index
      %38 = vector.load %arg6[%c0_34, %c0_35] : memref<1x128xf32, #tpu.memory_space<vmem>>, vector<1x128xf32>
      %39 = vector.broadcast %38 : vector<1x128xf32> to vector<2x128xf32>
      %40 = arith.addf %37, %39 : vector<2x128xf32>
      %cst_36 = arith.constant 0.000000e+00 : f32
      %41 = vector.broadcast %cst_36 : f32 to vector<2x128xf32>
      %42 = arith.maximumf %40, %41 : vector<2x128xf32>
      %43 = arith.truncf %42 : vector<2x128xf32> to vector<2x128xbf16>
      %c0_37 = arith.constant 0 : index
      %c0_38 = arith.constant 0 : index
      %44 = vector.load %arg9[%c0_37, %c0_38] : memref<128x128xbf16, #tpu.memory_space<vmem>>, vector<128x128xbf16>
      %cst_39 = arith.constant dense<0.000000e+00> : vector<2x128xf32>
      %45 = tpu.matmul %43, %44, %cst_39 {dimension_numbers = #tpu.dot_dimension_numbers<[1], [0], [0], [1], [0, 0, 1, 1], [], []>} : vector<2x128xbf16>, vector<128x128xbf16>, vector<2x128xf32> -> vector<2x128xf32>
      %46 = arith.truncf %33 : vector<2x128xf32> to vector<2x128xbf16>
      %c0_40 = arith.constant 0 : index
      %c0_41 = arith.constant 0 : index
      %47 = vector.load %arg10[%c0_40, %c0_41] : memref<128x128xbf16, #tpu.memory_space<vmem>>, vector<128x128xbf16>
      %cst_42 = arith.constant dense<0.000000e+00> : vector<2x128xf32>
      %48 = tpu.matmul %46, %47, %cst_42 {dimension_numbers = #tpu.dot_dimension_numbers<[1], [0], [0], [1], [0, 0, 1, 1], [], []>} : vector<2x128xbf16>, vector<128x128xbf16>, vector<2x128xf32> -> vector<2x128xf32>
      %49 = arith.addf %45, %48 : vector<2x128xf32>
      %c0_43 = arith.constant 0 : index
      %c0_44 = arith.constant 0 : index
      %50 = vector.load %arg11[%c0_43, %c0_44] : memref<1x128xf32, #tpu.memory_space<vmem>>, vector<1x128xf32>
      %51 = vector.broadcast %50 : vector<1x128xf32> to vector<2x128xf32>
      %52 = arith.addf %49, %51 : vector<2x128xf32>
      %c0_45 = arith.constant 0 : index
      %c0_46 = arith.constant 0 : index
      %53 = vector.load %arg12[%c0_45, %c0_46] : memref<2x128xf32, #tpu.memory_space<vmem>>, vector<2x128xf32>
      tpu.vector_store %arg12[%c0_45, %c0_46], %52 {strides = array<i32>} : memref<2x128xf32, #tpu.memory_space<vmem>>, vector<2x128xf32>,
    } else {
    }
    return
  }
  func.func @transform_0(%arg0: i32, %arg1: i32) -> (i32, i32) {
    %c0_i32 = arith.constant 0 : i32
    %c0_i32_0 = arith.constant 0 : i32
    return %arg0, %c0_i32 : i32, i32
  }
  func.func @transform_1(%arg0: i32, %arg1: i32) -> (i32, i32, i32) {
    %c0_i32 = arith.constant 0 : i32
    %c0_i32_0 = arith.constant 0 : i32
    return %arg0, %arg1, %c0_i32 : i32, i32, i32
  }
  func.func @transform_2(%arg0: i32, %arg1: i32) -> (i32, i32, i32) {
    %c0_i32 = arith.constant 0 : i32
    %c0_i32_0 = arith.constant 0 : i32
    return %arg0, %c0_i32, %arg1 : i32, i32, i32
  }
  func.func @transform_3(%arg0: i32, %arg1: i32) -> (i32, i32) {
    %c0_i32 = arith.constant 0 : i32
    %c0_i32_0 = arith.constant 0 : i32
    %c0_i32_1 = arith.constant 0 : i32
    return %c0_i32, %c0_i32_0 : i32, i32
  }
  func.func @transform_4(%arg0: i32, %arg1: i32) -> (i32, i32) {
    %c0_i32 = arith.constant 0 : i32
    %c0_i32_0 = arith.constant 0 : i32
    %c0_i32_1 = arith.constant 0 : i32
    return %c0_i32, %c0_i32_0 : i32, i32
  }
  func.func @transform_5(%arg0: i32, %arg1: i32) -> (i32, i32) {
    %c0_i32 = arith.constant 0 : i32
    %c0_i32_0 = arith.constant 0 : i32
    %c0_i32_1 = arith.constant 0 : i32
    return %c0_i32, %c0_i32_0 : i32, i32
  }
  func.func @transform_6(%arg0: i32, %arg1: i32) -> (i32, i32) {
    %c0_i32 = arith.constant 0 : i32
    %c0_i32_0 = arith.constant 0 : i32
    %c0_i32_1 = arith.constant 0 : i32
    return %c0_i32, %c0_i32_0 : i32, i32
  }
  func.func @transform_7(%arg0: i32, %arg1: i32) -> (i32, i32) {
    %c0_i32 = arith.constant 0 : i32
    %c0_i32_0 = arith.constant 0 : i32
    %c0_i32_1 = arith.constant 0 : i32
    return %c0_i32, %c0_i32_0 : i32, i32
  }
  func.func @transform_8(%arg0: i32, %arg1: i32) -> (i32, i32) {
    %c0_i32 = arith.constant 0 : i32
    %c0_i32_0 = arith.constant 0 : i32
    %c0_i32_1 = arith.constant 0 : i32
    return %c0_i32, %c0_i32_0 : i32, i32
  }
  func.func @transform_9(%arg0: i32, %arg1: i32) -> (i32, i32) {
    %c0_i32 = arith.constant 0 : i32
    %c0_i32_0 = arith.constant 0 : i32
    %c0_i32_1 = arith.constant 0 : i32
    return %c0_i32, %c0_i32_0 : i32, i32
  }
  func.func @transform_10(%arg0: i32, %arg1: i32) -> (i32, i32) {
    %c0_i32 = arith.constant 0 : i32
    %c0_i32_0 = arith.constant 0 : i32
    return %arg0, %c0_i32 : i32, i32
  }
}

</mosaic_0001>

<bundles_post_ra>
// kernel: tpu_custom_call.1
= control target key start
LH: loop header
LB: loop body
LE: loop exit
PB: predicated region body
PF: predicated region fallthrough
CT: control target
= control target key end

     0   :  { %15 = vsyncpa [#allocation5], 0  ;;  %s1857_s0 = inlined_call_operand.vmem [shape: f32[2,4], index: 0, kind: input, shape index: {}]   ;;  %s1858_s1 = inlined_call_operand.hbm [shape: bf16[2,8,768], index: 1, kind: input, shape index: {}]   ;;  %s1859_s2 = inlined_call_operand.vmem [shape: bf16[2,1,8], index: 2, kind: input, shape index: {}]   ;;  %s1860_s3 = inlined_call_operand.hbm [shape: bf16[4,128], index: 3, kind: input, shape index: {}]   ;;  %s1861_s4 = inlined_call_operand.vmem [shape: f32[1,128], index: 4, kind: input, shape index: {}]   ;;  %s1862_s5 = inlined_call_operand.hbm [shape: bf16[768,128], index: 5, kind: input, shape index: {}]   ;;  %s1863_s6 = inlined_call_operand.vmem [shape: f32[1,128], index: 6, kind: input, shape index: {}]   ;;  %s1864_s7 = inlined_call_operand.hbm [shape: bf16[128,128], index: 7, kind: input, shape index: {}]   ;;  %s1865_s8 = inlined_call_operand.hbm [shape: bf16[128,128], index: 8, kind: input, shape index: {}]   ;;  %s1866_s9 = inlined_call_operand.vmem [shape: f32[1,128], index: 9, kind: input, shape index: {}]   ;;  %s1867_s10 = inlined_call_operand.hbm [shape: f32[2,128], index: 10, kind: output, shape index: {}]  }
   0x1   :  { %16 = vsyncpa [#allocation8], 0 }
   0x2   :  { %17 = vsyncpa [#allocation11], 0  ;;  %s41_s15 = sshll.u32 %s1860_s3, 4  ;;  %s42_s15 = int_to_ptr.hbm [resolvable:$true] %s41_s15 }
   0x3   :  { %18 = vsyncpa [#allocation6], 0  ;;  %s1672_s16 = smov [#allocation7]   ;;  %s68_s20 = sshll.u32 %s1864_s7, 4  ;;  %s69_s20 = int_to_ptr.hbm [resolvable:$true] %s68_s20 }
   0x4   :  { %s43_s17 = sshll.u32 %s1672_s16, 4  ;;  %s1673_s21 = smov [#allocation10]   ;;  %s44_s17 = int_to_ptr.vmem [resolvable:$true] %s43_s17 }
   0x5   :  { %46 = dma.hbm_to_vmem [thread:$0]  %s42_s15, 32, %s44_s17, [#allocation8]  }
   0x6   :  { %s70_s22 = sshll.u32 %s1673_s21, 4  ;;  %s25_s25 = sshll.u32 %s1858_s1, 4  ;;  %s71_s22 = int_to_ptr.vmem [resolvable:$true] %s70_s22  ;;  %s26_s25 = int_to_ptr.hbm [resolvable:$true] %s25_s25 }
   0x7   :  { %s1674_s3 = smov 64   ;;  %s1675_s26 = smov 4  }
   0x8   :  { %76 = dma.hbm_to_vmem [thread:$0]  %s69_s20, 1024, %s71_s22, [#allocation11], %s1674_s3, %s1674_s3, %s1675_s26  }
   0x9   :  { %s1676_s27 = smov [#allocation4]   ;;  %s53_s11 = sshll.u32 %s1862_s5, 4  ;;  %s54_s11 = int_to_ptr.hbm [resolvable:$true] %s53_s11 }
   0xa   :  { %s27_s28 = sshll.u32 %s1676_s27, 4  ;;  %s1677_s7 = smov 384   ;;  %s28_s28 = int_to_ptr.vmem [resolvable:$true] %s27_s28 }
   0xb   :  { %s1678_s12 = smov 24   ;;  %s1679_s13 = smov [#allocation9]  }
   0xc   :  { %33 = dma.hbm_to_vmem [thread:$0]  %s26_s25, 768, %s28_s28, [#allocation5], %s1677_s7, %s1677_s7, %s1678_s12  }
   0xd   :  { %s55_s14 = sshll.u32 %s1679_s13, 4  ;;  %s81_s16 = sshll.u32 %s1865_s8, 4  ;;  %s56_s14 = int_to_ptr.vmem [resolvable:$true] %s55_s14  ;;  %s82_s16 = int_to_ptr.hbm [resolvable:$true] %s81_s16 }
   0xe   :  { %61 = dma.hbm_to_vmem [thread:$0]  %s54_s11, 6144, %s56_s14, [#allocation8], %s1674_s3, %s1674_s3, %s1675_s26  }
   0xf   :  { %s1680_s17 = smov [#allocation12]  }
  0x10   :  { %s83_s18 = sshll.u32 %s1680_s17, 4  ;;  %s84_s18 = int_to_ptr.vmem [resolvable:$true] %s83_s18 }
  0x11   :  { %89 = dma.hbm_to_vmem [thread:$0]  %s82_s16, 1024, %s84_s18, [#allocation11], %s1674_s3, %s1674_s3, %s1675_s26  }
  0x12   :  { %1664 = dma.done.wait [#allocation5], 768  }
  0x13   :  { %1665 = vsyncadd [#allocation5], 4294966528 }
  0x14   :  { %1666 = dma.done.wait [#allocation8], 6176  }
  0x15   :  { %1667 = vsyncadd [#allocation8], 4294961120 }
  0x16   :  { %1668 = dma.done.wait [#allocation11], 2048  }
  0x17   :  { %1669 = vsyncadd [#allocation11], 4294965248  ;;  %vm420_vm0 = vcmask 57344   ;;  %v1758_v0 = vld [vmem:[%s1859_s2 + $0x1] sm:$0x1]  ;;  %v121_v2 = vld [vmem:[#allocation4] sm:$0xff] }
  0x18   :  { %v1763_v1 = vld [vmem:[%s1859_s2] sm:$0x1]  ;;  %vm148_vm1 = vcmask 1043456   ;;  %v419_v3 = vunpack.c.l.bf16 %v1758_v0  ;;  %v132_v4 = vunpack.c.l.b16 %v121_v2  ;;  %v133_v5 = vunpack.c.h.b16 %v121_v2  ;;  %v123_v7 = vld [vmem:[#allocation4 + $0x10] sm:$0xff]  ;;  %v124_v12 = vld [vmem:[#allocation4 + $0x18] sm:$0xff]  ;;  %s1684_s3 = smov [#allocation13]  }
  0x19   :  { %vm144_vm2 = vcmask 64512   ;;  %v122_v6 = vld [vmem:[#allocation4 + $0x8] sm:$0xff]  ;;  %v136_v10 = vunpack.c.l.b16 %v123_v7  ;;  %v137_v11 = vunpack.c.h.b16 %v123_v7  ;;  %v418_v14 = vunpack.c.l.bf16 %v1763_v1  ;;  %v125_v21 = vld [vmem:[#allocation4 + $0x20] sm:$0xff]  ;;  %s1153_s26 = sshll.u32 %s1684_s3, 4  ;;  %s1155_s28 = sshll.u32 %s1867_s10, 4  ;;  %s1154_s26 = int_to_ptr.vmem [resolvable:$true] %s1153_s26  ;;  %s1156_s28 = int_to_ptr.hbm [resolvable:$true] %s1155_s28 }
  0x1a   :  { %v135_v8 = vunpack.c.h.b16 %v122_v6  ;;  %v134_v9 = vunpack.c.l.b16 %v122_v6  ;;  %v424_v13 = vsel %vm420_vm0, %v419_v3, 0.0  ;;  %v138_v15 = vpack.c.b16 %v132_v4, %v132_v4  ;;  %v126_v39 = vld [vmem:[#allocation4 + $0x28] sm:$0xff] }
  0x1b   :  { %v139_v16 = vpack.c.b16 %v133_v5, %v133_v5  ;;  %425 = vadd.xlane.f32.xlu0 %v424_v13  ;;  %v142_v19 = vpack.c.b16 %v136_v10, %v136_v10  ;;  %v143_v20 = vpack.c.b16 %v137_v11, %v137_v11  ;;  %v249_v24 = vunpack.c.h.b16 %v124_v12  ;;  %v1443_v10 = vld [vmem:[#allocation9 + $0x38] sm:$0xff] }
  0x1c   :  { %v141_v17 = vpack.c.b16 %v135_v8, %v135_v8  ;;  %v140_v18 = vpack.c.b16 %v134_v9, %v134_v9  ;;  %v150_v22 = vsel %vm148_vm1, %v138_v15, 0  ;;  %v248_v25 = vunpack.c.l.b16 %v124_v12  ;;  %v1451_v11 = vld [vmem:[#allocation9 + $0x78] sm:$0xff]  ;;  %v1450_v15 = vld [vmem:[#allocation9 + $0x70] sm:$0xff] }
  0x1d   :  { %v153_v23 = vsel %vm148_vm1, %v139_v16, 0  ;;  %174 = vmatpush.bf16.msra.mxu0 %v150_v22  ;;  %v162_v28 = vsel %vm148_vm1, %v142_v19, 0  ;;  %v165_v29 = vsel %vm148_vm1, %v143_v20, 0  ;;  %v255_v30 = vpack.c.b16 %v249_v24, %v249_v24  ;;  %v1459_v16 = vld [vmem:[#allocation9 + $0xb8] sm:$0xff]  ;;  %v1458_v22 = vld [vmem:[#allocation9 + $0xb0] sm:$0xff] }
  0x1e   :  { %187 = vmatpush.bf16.msra.mxu1 %v153_v23  ;;  %v159_v26 = vsel %vm148_vm1, %v141_v17, 0  ;;  %v156_v27 = vsel %vm148_vm1, %v140_v18, 0  ;;  %v254_v31 = vpack.c.b16 %v248_v25, %v248_v25  ;;  %v250_v32 = vunpack.c.l.b16 %v125_v21  ;;  %v1467_v18 = vld [vmem:[#allocation9 + $0xf8] sm:$0xff]  ;;  %v1466_v25 = vld [vmem:[#allocation9 + $0xf0] sm:$0xff] }
  0x1f   :  { %213 = vmatpush.bf16.msra.mxu3 %v159_v26  ;;  %200 = vmatpush.bf16.msra.mxu2 %v156_v27  ;;  %v251_v33 = vunpack.c.h.b16 %v125_v21  ;;  %v421_v34 = vsel %vm420_vm0, %v418_v14, 0.0  ;;  %v267_v35 = vsel %vm148_vm1, %v255_v30, 0  ;;  %v253_v40 = vunpack.c.h.b16 %v126_v39  ;;  %v1442_v14 = vld [vmem:[#allocation9 + $0x30] sm:$0xff]  ;;  %v1441_v26 = vld [vmem:[#allocation9 + $0x28] sm:$0xff] }
  0x20   :  { %1167 = vmatmul.msk.bf16.vlgmr.msra.gmra.mxu0 %vm144_vm2, %v1763_v1  ;;  %v264_v36 = vsel %vm148_vm1, %v254_v31, 0  ;;  %v256_v37 = vpack.c.b16 %v250_v32, %v250_v32  ;;  %v252_v41 = vunpack.c.l.b16 %v126_v39  ;;  %vm119_vm3 = vcmask 1024   ;;  %v1449_v27 = vld [vmem:[#allocation9 + $0x68] sm:$0xff] }
  0x21   :  { %226 = vmatpush.bf16.msrb.mxu0 %v162_v28  ;;  %1168 = vmatmul.msk.bf16.vlgmr.msra.gmra.mxu1 %vm144_vm2, %v1763_v1  ;;  %v257_v38 = vpack.c.b16 %v251_v33, %v251_v33  ;;  %v259_v44 = vpack.c.b16 %v253_v40, %v253_v40  ;;  %v1681_v48 = vmov 0.0   ;;  %v1682_v49 = vmov 0   ;;  %v1457_v28 = vld [vmem:[#allocation9 + $0xa8] sm:$0xff] }
  0x22   :  { %239 = vmatpush.bf16.msrb.mxu1 %v165_v29  ;;  %1170 = vmatmul.msk.bf16.vlgmr.msra.gmra.mxu3 %vm144_vm2, %v1763_v1  ;;  %v270_v42 = vsel %vm148_vm1, %v256_v37, 0  ;;  %v258_v45 = vpack.c.b16 %v252_v41, %v252_v41  ;;  %120 = vst.msk [vmem:[#allocation3] sm:$0x3] %vm119_vm3, %v1681_v48  ;;  %vm396_vm4 = vcmask 1041409   ;;  %v1465_v30 = vld [vmem:[#allocation9 + $0xe8] sm:$0xff]  ;;  %vm381_vm9 = vcmask 1041408  }
  0x23   :  { %1169 = vmatmul.msk.bf16.vlgmr.msra.gmra.mxu2 %vm144_vm2, %v1763_v1  ;;  %301 = vmatpush.bf16.msrb.mxu3 %v267_v35  ;;  %v273_v43 = vsel %vm148_vm1, %v257_v38, 0  ;;  %v279_v46 = vsel %vm148_vm1, %v259_v44, 0  ;;  %118 = vst [vmem:[#allocation2 + $0x8] sm:$0xf] %v1681_v48  ;;  %v1448_v35 = vld [vmem:[#allocation9 + $0x60] sm:$0xff]  ;;  %vm383_vm10 = vcmask 1045508  }
  0x24   :  { %288 = vmatpush.bf16.msrb.mxu2 %v264_v36  ;;  %422 = vadd.xlane.f32.xlu0 %v421_v34  ;;  %v276_v47 = vsel %vm148_vm1, %v258_v45, 0  ;;  %v1440_v34 = vld [vmem:[#allocation9 + $0x20] sm:$0xff]  ;;  %v1447_v48 = vld [vmem:[#allocation9 + $0x58] sm:$0xff]  ;;  %vm398_vm11 = vcmask 1043459   ;;  %vm400_vm12 = vcmask 1045509   ;;  %vm402_vm13 = vcmask 1047559  }
  0x25   :  { %314 = vmatpush.bf16.msra.mxu0 %v270_v42  ;;  %1513 = vset.pattern.permute.xlu1 %v1682_v49  ;;  %v1456_v38 = vld [vmem:[#allocation9 + $0xa0] sm:$0xff]  ;;  %vm965_vm14 = vcmask 31744  }
  0x26   :  { %327 = vmatpush.bf16.msra.mxu1 %v273_v43  ;;  %1514 = vset.pattern.permute.xlu0 %v1682_v49  ;;  %v1464_v42 = vld [vmem:[#allocation9 + $0xe0] sm:$0xff] }
  0x27   :  { %353 = vmatpush.bf16.msra.mxu3 %v279_v46 }
  0x28   :  { %340 = vmatpush.bf16.msra.mxu2 %v276_v47  ;;  %v1439_v47 = vld [vmem:[#allocation9 + $0x18] sm:$0xff] }
  0x29   :  { %v417_v52 = vld [vmem:[#allocation3] sm:$0x3] }
  0x30   :  { %1171 = vmatmul.msk.bf16.vlgmr.msrb.gmra.mxu0 %vm144_vm2, %v1763_v1 }
  0x31   :  { %1172 = vmatmul.msk.bf16.vlgmr.msrb.gmra.mxu1 %vm144_vm2, %v1763_v1  ;;  %879 = vmatpush.bf16.msrb.mxu0 %v1443_v10  ;;  %v1436_v10 = vld [vmem:[#allocation9] sm:$0xff] }
  0x32   :  { %1174 = vmatmul.msk.bf16.vlgmr.msrb.gmra.mxu3 %vm144_vm2, %v1758_v0  ;;  %892 = vmatpush.bf16.msrb.mxu1 %v1451_v11  ;;  %v1444_v11 = vld [vmem:[#allocation9 + $0x40] sm:$0xff] }
  0x33   :  { %1173 = vmatmul.msk.bf16.vlgmr.msrb.gmra.mxu2 %vm144_vm2, %v1758_v0  ;;  %918 = vmatpush.bf16.msrb.mxu3 %v1467_v18 }
  0x34   :  { %905 = vmatpush.bf16.msrb.mxu2 %v1459_v16 }
  0x35   :  { %880 = vmatpush.bf16.msrb.mxu0 %v1442_v14  ;;  %v1475_v14 = vld [vmem:[#allocation9 + $0x138] sm:$0xff] }
  0x36   :  { %893 = vmatpush.bf16.msrb.mxu1 %v1450_v15  ;;  %v1483_v15 = vld [vmem:[#allocation9 + $0x178] sm:$0xff] }
  0x37   :  { %919 = vmatpush.bf16.msrb.mxu3 %v1466_v25  ;;  %v1461_v25 = vld [vmem:[#allocation9 + $0xc8] sm:$0xff] }
  0x38   :  { %906 = vmatpush.bf16.msrb.mxu2 %v1458_v22  ;;  %v1474_v22 = vld [vmem:[#allocation9 + $0x130] sm:$0xff] }
  0x39   :  { %881 = vmatpush.bf16.msrb.mxu0 %v1441_v26  ;;  %v1473_v26 = vld [vmem:[#allocation9 + $0x128] sm:$0xff] }
  0x3a   :  { %894 = vmatpush.bf16.msrb.mxu1 %v1449_v27  ;;  %v1481_v27 = vld [vmem:[#allocation9 + $0x168] sm:$0xff] }
  0x3b   :  { %920 = vmatpush.bf16.msrb.mxu3 %v1465_v30  ;;  %v1472_v30 = vld [vmem:[#allocation9 + $0x120] sm:$0xff] }
  0x3c   :  { %907 = vmatpush.bf16.msrb.mxu2 %v1457_v28  ;;  %v1452_v28 = vld [vmem:[#allocation9 + $0x80] sm:$0xff] }
  0x3d   :  { %882 = vmatpush.bf16.msrb.mxu0 %v1440_v34  ;;  %v960_v34 = vld [vmem:[#allocation7] sm:$0x3] }
  0x3e   :  { %895 = vmatpush.bf16.msrb.mxu1 %v1448_v35  ;;  %v970_v35 = vsel %vm381_vm9, %v960_v34, 0 }
  0x3f   :  { %921 = vmatpush.bf16.msrb.mxu3 %v1464_v42  ;;  %v1468_v42 = vld [vmem:[#allocation9 + $0x100] sm:$0xff] }
  0x40   :  { %1175 = vmatmul.msk.bf16.vlgmr.msra.gmra.mxu0 %vm144_vm2, %v1758_v0  ;;  %908 = vmatpush.bf16.msrb.mxu2 %v1456_v38  ;;  %v1469_v38 = vld [vmem:[#allocation9 + $0x108] sm:$0xff] }
  0x41   :  { %1176 = vmatmul.msk.bf16.vlgmr.msra.gmra.mxu1 %vm144_vm2, %v1758_v0  ;;  %883 = vmatpush.bf16.msrb.mxu0 %v1439_v47 }
  0x42   :  { %1178 = vmatmul.msk.bf16.vlgmr.msra.gmra.mxu3 %vm144_vm2, %v1758_v0  ;;  %896 = vmatpush.bf16.msrb.mxu1 %v1447_v48 }
  0x43   :  { %1177 = vmatmul.msk.bf16.vlgmr.msra.gmra.mxu2 %vm144_vm2, %v1758_v0 }
  0x8e   :  { %v426_v50 = vpop.xlane.xlu0 %425 }
  0x8f   :  { %v429_v51 = vrot.slane %v426_v50, 7  ;;  %v1455_v50 = vld [vmem:[#allocation9 + $0x98] sm:$0xff] }
  0x90   :  { %909 = vmatpush.bf16.msrb.mxu2 %v1455_v50 }
  0x97   :  { %v423_v53 = vpop.xlane.xlu0 %422 }
  0x98   :  { %v430_v54 = vsel %vm396_vm4, %v429_v51, %v423_v53  ;;  %v1463_v53 = vld [vmem:[#allocation9 + $0xd8] sm:$0xff] }
  0x99   :  { %v432_v55 = vadd.f32 %v430_v54, %v417_v52  ;;  %922 = vmatpush.bf16.msrb.mxu3 %v1463_v53 }
  0x9b   :  { %434 = vst.msk [vmem:[#allocation3] sm:$0x3] %vm119_vm3, %v432_v55  ;;  %v1438_v55 = vld [vmem:[#allocation9 + $0x10] sm:$0xff] }
  0x9c   :  { %884 = vmatpush.bf16.msrb.mxu0 %v1438_v55 }
  0x9d   :  { %v1806_v56 = vpop.f32.mrf.mxu0 }
  0x9e   :  { %v1808_v57 = vpop.f32.mrf.mxu1 }
  0x9f   :  { %v373_v29 = vrot.slane %v1808_v57, 6 }
  0xa1   :  { %v382_v39 = vsel %vm381_vm9, %v1806_v56, %v373_v29  ;;  %v1446_v56 = vld [vmem:[#allocation9 + $0x50] sm:$0xff]  ;;  %v1460_v29 = vld [vmem:[#allocation9 + $0xc0] sm:$0xff] }
  0xa2   :  { %v438_v58 = vld [vmem:[#allocation3] sm:$0x3]  ;;  %897 = vmatpush.bf16.msrb.mxu1 %v1446_v56 }
  0xa3   :  { %v439_v59 = vmax.f32 %v438_v58, 1.0 }
  0xa5   :  { %1518 = vrcp.f32 %v439_v59  ;;  %v1810_v60 = vpop.f32.mrf.mxu3  ;;  %v178_v62 = vpop.f32.mrf.mxu0  ;;  %v453_v7 = vand.u32 2147483648, %v439_v59  ;;  %v451_v9 = vand.u32 2147483647, %v439_v59  ;;  %vm447_vm6 = vweird.f32 %v439_v59 }
  0xa6   :  { %v1812_v61 = vpop.f32.mrf.mxu2  ;;  %v191_v63 = vpop.f32.mrf.mxu1  ;;  %v375_v31 = vrot.slane %v1810_v60, 2 }
  0xa7   :  { %v454_v13 = vor.u32 1.1754944e-38, %v453_v7  ;;  %vm452_vm8 = vcmp.eq.f32.partialorder %v451_v9, 8.507059e+37  ;;  %v374_v32 = vrot.slane %v1812_v61, 4 }
  0xa9   :  { %v384_v43 = vsel %vm383_vm10, %v374_v32, %v375_v31  ;;  %v1480_v31 = vld [vmem:[#allocation9 + $0x160] sm:$0xff]  ;;  %v1471_v32 = vld [vmem:[#allocation9 + $0x118] sm:$0xff] }
  0xaa   :  { %v385_v51 = vsel %vm148_vm1, %v382_v39, %v384_v43  ;;  %v1477_v39 = vld [vmem:[#allocation9 + $0x148] sm:$0xff]  ;;  %v1476_v43 = vld [vmem:[#allocation9 + $0x140] sm:$0xff] }
  0xab   :  { %v1519_v0 = vpop.eup %1518 }
  0xac   :  { %v443_v1 = vmul.f32 %v1519_v0, %v439_v59  ;;  %vm448_vm5 = vweird.f32 %v1519_v0 }
  0xad   :  { %v217_v2 = vpop.f32.mrf.mxu3  ;;  %v1814_v5 = vpop.f32.mrf.mxu0  ;;  %vm449_vm7 = vmor %vm447_vm6, %vm448_vm5 }
  0xae   :  { %v204_v3 = vpop.f32.mrf.mxu2  ;;  %v444_v4 = vsub.f32 1.0, %v443_v1  ;;  %v1816_v6 = vpop.f32.mrf.mxu1  ;;  %v1437_v2 = vld [vmem:[#allocation9 + $0x8] sm:$0xff] }
  0xaf   :  { %v376_v57 = vrot.slane %v1816_v6, 6  ;;  %v1445_v3 = vld [vmem:[#allocation9 + $0x48] sm:$0xff]  ;;  %885 = vmatpush.bf16.msrb.mxu0 %v1437_v2 }
  0xb0   :  { %v445_v8 = vmul.f32 %v1519_v0, %v444_v4  ;;  %898 = vmatpush.bf16.msrb.mxu1 %v1445_v3  ;;  %v1497_v3 = vld [vmem:[#allocation12 + $0x28] sm:$0xff] }
  0xb1   :  { %v386_v4 = vsel %vm381_vm9, %v1814_v5, %v376_v57 }
  0xb2   :  { %v446_v12 = vadd.f32 %v1519_v0, %v445_v8 }
  0xb3   :  { %886 = vmatpush.bf16.msrb.mxu0 %v1436_v10  ;;  %v1494_v10 = vld [vmem:[#allocation12 + $0x10] sm:$0xff] }
  0xb4   :  { %v450_v17 = vsel %vm449_vm7, %v1519_v0, %v446_v12  ;;  %v360_v12 = vld [vmem:[#allocation2 + $0x8] sm:$0xf]  ;;  %899 = vmatpush.bf16.msrb.mxu1 %v1444_v11  ;;  %v1487_v11 = vld [vmem:[#allocation10 + $0x18] sm:$0xff] }
  0xb5   :  { %v455_v19 = vsel %vm452_vm8, %v454_v13, %v450_v17  ;;  %v303_v20 = vpop.f32.mrf.mxu3  ;;  %v230_v23 = vpop.f32.mrf.mxu0 }
  0xb6   :  { %v290_v21 = vpop.f32.mrf.mxu2  ;;  %459 = vperm.xlu1 %1513, %v455_v19   ;;  %v243_v24 = vpop.f32.mrf.mxu1  ;;  %v377_v33 = vrot.slane %v303_v20, 6  ;;  %v1454_v20 = vld [vmem:[#allocation9 + $0x90] sm:$0xff] }
  0xb7   :  { %931 = vmatpush.bf16.msra.mxu0 %v1475_v14  ;;  %v1482_v23 = vld [vmem:[#allocation9 + $0x170] sm:$0xff]  ;;  %910 = vmatpush.bf16.msrb.mxu2 %v1454_v20  ;;  %v1453_v24 = vld [vmem:[#allocation9 + $0x88] sm:$0xff]  ;;  %v1492_v14 = vld [vmem:[#allocation12] sm:$0xff] }
  0xb8   :  { %v387_v46 = vsel %vm381_vm9, %v290_v21, %v377_v33  ;;  %944 = vmatpush.bf16.msra.mxu1 %v1483_v15  ;;  %v1462_v21 = vld [vmem:[#allocation9 + $0xd0] sm:$0xff]  ;;  %v1479_v33 = vld [vmem:[#allocation9 + $0x158] sm:$0xff]  ;;  %v1485_v15 = vld [vmem:[#allocation10 + $0x8] sm:$0xff] }
  0xb9   :  { %923 = vmatpush.bf16.msrb.mxu3 %v1462_v21 }
  0xbb   :  { %932 = vmatpush.bf16.msra.mxu0 %v1474_v22  ;;  %911 = vmatpush.bf16.msrb.mxu2 %v1453_v24 }
  0xbc   :  { %945 = vmatpush.bf16.msra.mxu1 %v1482_v23 }
  0xbd   :  { %v305_v36 = vpop.f32.mrf.mxu3  ;;  %v316_v40 = vpop.f32.mrf.mxu0  ;;  %924 = vmatpush.bf16.msrb.mxu3 %v1461_v25 }
  0xbe   :  { %v292_v37 = vpop.f32.mrf.mxu2  ;;  %v329_v41 = vpop.f32.mrf.mxu1  ;;  %v378_v44 = vrot.slane %v316_v40, 4  ;;  %v1470_v36 = vld [vmem:[#allocation9 + $0x110] sm:$0xff]  ;;  %v1683_v40 = vmov 269488144  }
  0xbf   :  { %v379_v45 = vrot.slane %v329_v41, 2  ;;  %933 = vmatpush.bf16.msra.mxu0 %v1473_v26  ;;  %912 = vmatpush.bf16.msrb.mxu2 %v1452_v28  ;;  %v1478_v37 = vld [vmem:[#allocation9 + $0x150] sm:$0xff]  ;;  %v462_v41 = vunpack.c.l.s4 %v1683_v40 }
  0xc0   :  { %946 = vmatpush.bf16.msra.mxu1 %v1481_v27 }
  0xc1   :  { %v388_v49 = vsel %vm383_vm10, %v378_v44, %v379_v45  ;;  %925 = vmatpush.bf16.msrb.mxu3 %v1460_v29  ;;  %v463_v44 = vunpack.c.0.s8 %v462_v41 }
  0xc2   :  { %v389_v52 = vsel %vm148_vm1, %v387_v46, %v388_v49  ;;  %v1499_v46 = vld [vmem:[#allocation12 + $0x38] sm:$0xff]  ;;  %v1498_v49 = vld [vmem:[#allocation12 + $0x30] sm:$0xff] }
  0xc3   :  { %v395_v54 = vrot.slane %v389_v52, 7  ;;  %934 = vmatpush.bf16.msra.mxu0 %v1472_v30  ;;  %979 = vmatpush.bf16.msra.mxu2 %v970_v35  ;;  %v1491_v52 = vld [vmem:[#allocation10 + $0x38] sm:$0xff] }
  0xc4   :  { %947 = vmatpush.bf16.msra.mxu1 %v1480_v31 }
  0xc5   :  { %v397_v58 = vsel %vm396_vm4, %v395_v54, %v385_v51  ;;  %v355_v59 = vpop.f32.mrf.mxu3  ;;  %v318_v63 = vpop.f32.mrf.mxu0  ;;  %1068 = vmatpush.bf16.msra.mxu3 %v1499_v46 }
  0xc6   :  { %v342_v60 = vpop.f32.mrf.mxu2  ;;  %v399_v61 = vsel %vm398_vm11, %v395_v54, %v397_v58  ;;  %v380_v62 = vrot.slane %v355_v59, 6  ;;  %v331_v0 = vpop.f32.mrf.mxu1 }
  0xc7   :  { %v401_v1 = vsel %vm400_vm12, %v395_v54, %v399_v61  ;;  %935 = vmatpush.bf16.msra.mxu0 %v1471_v32  ;;  %v958_v61 = vld [vmem:[%s1857_s0] sm:$0x3] }
  0xc8   :  { %v1833_v6 = vsel %vm402_vm13, %v395_v54, %v401_v1  ;;  %v390_v7 = vsel %vm381_vm9, %v342_v60, %v380_v62  ;;  %948 = vmatpush.bf16.msra.mxu1 %v1479_v33  ;;  %v959_v0 = vpack.c.bf16 %v958_v61, %v958_v61  ;;  %v1516_v33 = vld [vmem:[%s1861_s4] ss:$0 sm:$0xff] }
  0xc9   :  { %v406_v8 = vrot.slane %v390_v7, 7  ;;  %1069 = vmatpush.bf16.msra.mxu3 %v1498_v49  ;;  %v1489_v7 = vld [vmem:[#allocation10 + $0x28] sm:$0xff] }
  0xcb   :  { %v407_v9 = vsel %vm396_vm4, %v406_v8, %v386_v4  ;;  %936 = vmatpush.bf16.msra.mxu0 %v1470_v36  ;;  %v1490_v4 = vld [vmem:[#allocation10 + $0x30] sm:$0xff] }
  0xcc   :  { %v408_v13 = vsel %vm398_vm11, %v406_v8, %v407_v9  ;;  %949 = vmatpush.bf16.msra.mxu1 %v1478_v37  ;;  %v1488_v9 = vld [vmem:[#allocation10 + $0x20] sm:$0xff] }
  0xcd   :  { %v409_v16 = vsel %vm400_vm12, %v406_v8, %v408_v13  ;;  %v357_v5 = vpop.f32.mrf.mxu3  ;;  %1070 = vmatpush.bf16.msra.mxu3 %v1497_v3  ;;  %v1486_v13 = vld [vmem:[#allocation10 + $0x10] sm:$0xff] }
  0xce   :  { %v344_v17 = vpop.f32.mrf.mxu2  ;;  %v410_v18 = vsel %vm402_vm13, %v406_v8, %v409_v16  ;;  %v1495_v8 = vld [vmem:[#allocation12 + $0x18] sm:$0xff]  ;;  %v1484_v16 = vld [vmem:[#allocation10] sm:$0xff] }
  0xcf   :  { %v414_v19 = vadd.f32 %v410_v18, %v360_v12  ;;  %937 = vmatpush.bf16.msra.mxu0 %v1469_v38  ;;  %v1493_v12 = vld [vmem:[#allocation12 + $0x8] sm:$0xff]  ;;  %v1515_v18 = vld [vmem:[%s1863_s6] ss:$0 sm:$0xff] }
  0xd0   :  { %950 = vmatpush.bf16.msra.mxu1 %v1477_v39 }
  0xd1   :  { %416 = vst [vmem:[#allocation2 + $0x8] sm:$0xf] %v414_v19 }
  0xd3   :  { %938 = vmatpush.bf16.msra.mxu0 %v1468_v42 }
  0xd4   :  { %951 = vmatpush.bf16.msra.mxu1 %v1476_v43 }
  0xd8   :  { %v441_v48 = vld [vmem:[#allocation2 + $0x8] sm:$0xf] }
 0x128   :  { %v460_v45 = vpop.permute.xlu1 %459 }
 0x129   :  { %v464_v47 = vperm.slane %v460_v45, %v463_v44  ;;  %v1517_v44 = vld [vmem:[%s1866_s9] ss:$0 sm:$0xff] }
 0x12b   :  { %v466_v50 = vmul.f32 %v464_v47, %v1833_v6  ;;  %v467_v51 = vmul.f32 %v464_v47, %v441_v48  ;;  %v1496_v6 = vld [vmem:[#allocation12 + $0x20] sm:$0xff] }
 0x12c   :  { %1071 = vmatpush.bf16.msra.mxu3 %v1496_v6 }
 0x12d   :  { %470 = vst [vmem:[#allocation1] ss:$4 sm:$0xff] %v466_v50 }
 0x12e   :  { %472 = vst [vmem:[#allocation1 + $0x20] ss:$4 sm:$0xff] %v467_v51 }
 0x130   :  { %1072 = vmatpush.bf16.msra.mxu3 %v1495_v8 }
 0x134   :  { %v473_v53 = vld.sshfl [vmem:[#allocation1] sm:$0xff pattern:$0x73625140]  ;;  %v474_v54 = vld.sshfl [vmem:[#allocation1 + $0x8] sm:$0xff pattern:$0x73625140]  ;;  %1073 = vmatpush.bf16.msra.mxu3 %v1494_v10 }
 0x135   :  { %v485_v55 = vpack.c.bf16 %v473_v53, %v473_v53  ;;  %v486_v56 = vpack.c.bf16 %v474_v54, %v474_v54  ;;  %v475_v57 = vld.sshfl [vmem:[#allocation1 + $0x10] sm:$0xff pattern:$0x73625140]  ;;  %v476_v58 = vld.sshfl [vmem:[#allocation1 + $0x18] sm:$0xff pattern:$0x73625140] }
 0x136   :  { %v487_v59 = vpack.c.bf16 %v475_v57, %v475_v57  ;;  %v488_v60 = vpack.c.bf16 %v476_v58, %v476_v58  ;;  %v477_v62 = vld.sshfl [vmem:[#allocation1 + $0x20] sm:$0xff pattern:$0x73625140]  ;;  %v478_v63 = vld.sshfl [vmem:[#allocation1 + $0x28] sm:$0xff pattern:$0x73625140] }
 0x137   :  { %887 = vmatmul.bf16.vlgmr.msrb.gmra.mxu0 %v485_v55  ;;  %900 = vmatmul.bf16.vlgmr.msrb.gmra.mxu1 %v486_v56  ;;  %v489_v1 = vpack.c.bf16 %v477_v62, %v477_v62  ;;  %v490_v2 = vpack.c.bf16 %v478_v63, %v478_v63 }
 0x138   :  { %913 = vmatmul.bf16.vlgmr.msrb.gmra.mxu2 %v487_v59  ;;  %926 = vmatmul.bf16.vlgmr.msrb.gmra.mxu3 %v488_v60 }
 0x139   :  { %1129 = vmatpush.bf16.msrb.mxu2 %v1491_v52  ;;  %1074 = vmatpush.bf16.msra.mxu3 %v1493_v12 }
 0x13d   :  { %1130 = vmatpush.bf16.msrb.mxu2 %v1490_v4  ;;  %1075 = vmatpush.bf16.msra.mxu3 %v1492_v14 }
 0x141   :  { %1131 = vmatpush.bf16.msrb.mxu2 %v1489_v7 }
 0x145   :  { %1132 = vmatpush.bf16.msrb.mxu2 %v1488_v9 }
 0x147   :  { %939 = vmatmul.bf16.vlgmr.msra.gmra.mxu0 %v489_v1  ;;  %952 = vmatmul.bf16.vlgmr.msra.gmra.mxu1 %v490_v2 }
 0x148   :  { %1371 = vmatmul.msk.bf16.vlgmr.msra.gmra.mxu2 %vm965_vm14, %v959_v0 }
 0x149   :  { %1133 = vmatpush.bf16.msrb.mxu2 %v1487_v11 }
 0x14d   :  { %1134 = vmatpush.bf16.msrb.mxu2 %v1486_v13 }
 0x151   :  { %1135 = vmatpush.bf16.msrb.mxu2 %v1485_v15 }
 0x155   :  { %1136 = vmatpush.bf16.msrb.mxu2 %v1484_v16 }
 0x1b4   :  { %v888_v5 = vpop.f32.mrf.mxu0  ;;  %v901_v17 = vpop.f32.mrf.mxu1 }
 0x1b5   :  { %v889_v19 = vadd.f32 %v1515_v18, %v888_v5 }
 0x1b7   :  { %v902_v24 = vadd.f32 %v901_v17, %v889_v19 }
 0x1bb   :  { %v914_v20 = vpop.f32.mrf.mxu2  ;;  %v927_v21 = vpop.f32.mrf.mxu3 }
 0x1bc   :  { %v890_v22 = vpop.f32.mrf.mxu0  ;;  %v903_v23 = vpop.f32.mrf.mxu1  ;;  %v915_v25 = vadd.f32 %v914_v20, %v902_v24 }
 0x1be   :  { %v928_v26 = vadd.f32 %v927_v21, %v915_v25 }
 0x1c3   :  { %v916_v27 = vpop.f32.mrf.mxu2  ;;  %v929_v28 = vpop.f32.mrf.mxu3 }
 0x1c4   :  { %v940_v29 = vpop.f32.mrf.mxu0  ;;  %v953_v30 = vpop.f32.mrf.mxu1 }
 0x1c5   :  { %v941_v31 = vadd.f32 %v940_v29, %v928_v26 }
 0x1c7   :  { %v954_v32 = vadd.f32 %v953_v30, %v941_v31 }
 0x1c9   :  { %v957_v34 = vmax.f32 %v954_v32, 0.0 }
 0x1cb   :  { %v1003_v35 = vpack.c.bf16 %v957_v34, %v957_v34  ;;  %v981_v36 = vpop.f32.mrf.mxu2 }
 0x1cc   :  { %v982_v37 = vadd.f32 %v1516_v33, %v981_v36  ;;  %v942_v38 = vpop.f32.mrf.mxu0  ;;  %v955_v39 = vpop.f32.mrf.mxu1 }
 0x1cd   :  { %1076 = vmatmul.bf16.vlgmr.msra.gmra.mxu3 %v1003_v35 }
 0x1ce   :  { %v985_v40 = vmax.f32 %v982_v37, 0.0 }
 0x1d0   :  { %v986_v41 = vpack.c.bf16 %v985_v40, %v985_v40 }
 0x1d2   :  { %1137 = vmatmul.bf16.vlgmr.msrb.gmra.mxu2 %v986_v41 }
 0x1d3   :  { %v983_v42 = vpop.f32.mrf.mxu2 }
 0x250   :  { %v1077_v43 = vpop.f32.mrf.mxu3 }
 0x255   :  { %v1138_v45 = vpop.f32.mrf.mxu2 }
 0x256   :  { %v1139_v46 = vadd.f32 %v1138_v45, %v1077_v43 }
 0x258   :  { %v1146_v47 = vadd.f32 %v1517_v44, %v1139_v46  ;;  %v1079_v48 = vpop.f32.mrf.mxu3 }
 0x25a   :  { %1147 = vst [vmem:[#allocation13] sm:$0x3] %v1146_v47 }
 0x25b   :  { %1158 = dma.vmem_to_hbm [thread:$0]  %s1154_s26, 32, %s1156_s28, [#allocation6]  }
 0x25d   :  { %v1140_v49 = vpop.f32.mrf.mxu2 }
 0x25e   :  { %1670 = dma.done.wait [#allocation6], 32  }
 0x25f   :  { %1671 = vsyncadd [#allocation6], 4294967264 }
 0x260   :  { %1163 = vsyncpa [#allocation5], 1 }
 0x261   :  { %1164 = vsyncpa [#allocation8], 1 }
 0x262   :  { %1165 = vsyncpa [#allocation11], 1 }
 0x263   :  { %1166 = vsyncpa [#allocation6], 1 }

</bundles_post_ra>
